<compile_context>
chip_gen: v5e
topology: v5e:2x2
jax: 0.10.0
libtpu: 0.0.40
codegen_flags: <defaults>
</compile_context>

<pallas_src>
import functools

import jax
import jax.numpy as jnp
from jax import lax
from jax.experimental import pallas as pl
from jax.experimental.pallas import tpu as pltpu


def _ls_ce_kernel(logits_ref, target_ref, out_ref, acc_ref, *,
                  eps: float, n_total: int, tile_rows: int,
                  full_blocks: int, any_masked: bool):
    p = pl.program_id(0)              # parallel partition (megacore axis on v7x)
    i = pl.program_id(1)              # sequential step within the partition
    steps = pl.num_programs(1)
    blk = p * steps + i               # UNclamped logical row-block id (for masking)

    @pl.when(i == 0)
    def _init():
        acc_ref[...] = jnp.zeros_like(acc_ref)

    x_nat = logits_ref[...]                                   # (TN, C) native dtype
    tn, c = x_nat.shape

    # Targets arrive lane-dense as a (1, 1, TN) block; one cheap XLU transpose gives
    # the (TN, 1) column needed for the per-row class compare.
    tgt = jnp.transpose(target_ref[0], (1, 0))                # (TN, 1) int32
    cls_idx = lax.broadcasted_iota(jnp.int32, (tn, c), 1)     # (TN, C)

    def tile_partial(mask_rows: bool):
        x = x_nat
        if mask_rows:
            row_ids = blk * tile_rows + lax.broadcasted_iota(jnp.int32, (tn, 1), 0)
            valid = row_ids < n_total                          # (TN, 1) bool
            # Zero garbage/NaN rows BEFORE max/exp so nothing leaks into lse.
            x = jnp.where(valid, x, jnp.zeros_like(x))
        # x[row, target[row]] gathered on the native dtype (one nonzero per row -> exact).
        x_t = jnp.sum(jnp.where(cls_idx == tgt, x, jnp.zeros_like(x)),
                      axis=-1, keepdims=True).astype(jnp.float32)        # (TN, 1)
        xf = x.astype(jnp.float32)                                        # (TN, C) f32
        m = jnp.max(xf, axis=-1, keepdims=True)
        lse = m + jnp.log(jnp.sum(jnp.exp(xf - m), axis=-1, keepdims=True))
        sum_x = jnp.sum(xf, axis=-1, keepdims=True)
        # Fused smoothed loss:  per_row = lse - (eps/C)*sum_x - (1-eps)*x_t
        per_row = lse - (eps / c) * sum_x - (1.0 - eps) * x_t
        if mask_rows:
            per_row = jnp.where(valid, per_row, 0.0)
        return jnp.sum(per_row, keepdims=True)                            # (1, 1)

    if any_masked:
        needs_mask = blk >= full_blocks      # ragged last block or clamped duplicate

        @pl.when(needs_mask)
        def _masked():
            acc_ref[...] += tile_partial(True)

        @pl.when(jnp.logical_not(needs_mask))
        def _plain():
            acc_ref[...] += tile_partial(False)
    else:
        acc_ref[...] += tile_partial(False)

    @pl.when(i == steps - 1)
    def _finalize():
        out_ref[0] = acc_ref[...] * (1.0 / n_total)            # per-partition partial


def label_smoothing_crossentropy(output: jax.Array,
                                 target: jax.Array,
                                 eps: float = 0.1,
                                 *,
                                 block_bytes: int = 2 * 1024 * 1024,
                                 max_tile_rows: int | None = None,
                                 num_partitions: int = 2) -> jax.Array:
    """Pallas TPU implementation of LabelSmoothingCrossentropy.forward.

    output: (N, C) logits (any float dtype; streamed native, upcast per tile in-kernel).
    target: (N,) integer class indices.
    Returns a scalar float32 loss.
    """
    n, c = output.shape
    itemsize = jnp.dtype(output.dtype).itemsize

    # ---- row tile: sized by bytes (~2 MiB of native logits per block) --------------
    # 2 MiB/block already sits on the measured HBM-roofline plateau and keeps the
    # in-kernel f32 temporaries (~several x block size) well inside v7x's 64 MiB VMEM.
    tn = max(1, block_bytes // max(1, c * itemsize))
    if max_tile_rows is not None:
        tn = min(tn, int(max_tile_rows))
    tn = min(tn, n)
    if tn < n:                                   # sublane-aligned unless full-extent
        tn = max(8, (tn // 8) * 8)
        tn = min(tn, n)

    total_blocks = pl.cdiv(n, tn)
    p_dim = max(1, min(int(num_partitions), total_blocks))   # 2 TCs on v7x; harmless else
    steps = pl.cdiv(total_blocks, p_dim)
    full_blocks = n // tn                        # blocks whose every row is valid
    any_masked = full_blocks < p_dim * steps     # ragged last block and/or duplicates
    last_blk = total_blocks - 1

    if p_dim * steps == total_blocks:
        def blk_of(pp, ii):
            return pp * steps + ii
    else:
        # Clamp out-of-range grid points onto the last real block; their rows are
        # masked to zero contribution inside the kernel.
        def blk_of(pp, ii):
            return jnp.minimum(pp * steps + ii, last_blk)

    # ---- targets: lane-dense (1, TN) blocks (no 128x lane padding in VMEM) ----------
    n_pad = total_blocks * tn
    tgt = target.astype(jnp.int32).reshape(n)
    if n_pad > n:
        tgt = jnp.pad(tgt, (0, n_pad - n))       # pad with class 0 (rows masked anyway)
    tgt = tgt.reshape(total_blocks, 1, tn)

    kernel = functools.partial(
        _ls_ce_kernel, eps=float(eps), n_total=n, tile_rows=tn,
        full_blocks=full_blocks, any_masked=any_masked)

    cost = pl.CostEstimate(
        flops=6 * n * c,
        transcendentals=n * c,
        bytes_accessed=n * c * itemsize + n_pad * 4 + p_dim * 4,
    )

    partials = pl.pallas_call(
        kernel,
        out_shape=jax.ShapeDtypeStruct((p_dim, 1, 1), jnp.float32),
        grid=(p_dim, steps),
        in_specs=[
            pl.BlockSpec((tn, c), lambda pp, ii: (blk_of(pp, ii), 0)),     # logits tile
            pl.BlockSpec((1, 1, tn), lambda pp, ii: (blk_of(pp, ii), 0, 0)),  # targets
        ],
        out_specs=pl.BlockSpec((1, 1, 1), lambda pp, ii: (pp, 0, 0)),      # per-P partial
        scratch_shapes=[pltpu.VMEM((1, 1), jnp.float32)],                  # running sum
        compiler_params=pltpu.CompilerParams(
            dimension_semantics=("parallel", "arbitrary"),
            vmem_limit_bytes=48 * 1024 * 1024,
        ),
        cost_estimate=cost,
    )(output, tgt)
    return jnp.sum(partials)     # sum the P per-partition partial losses (scalar f32)


def _reference(output, target, eps=0.1):
    # Pure-JAX reference matching the PyTorch module exactly.
    c = output.shape[-1]
    log_preds = jax.nn.log_softmax(output.astype(jnp.float32), axis=-1)
    loss1 = (-log_preds.sum(axis=-1)).mean() * eps / c
    nll = -jnp.take_along_axis(log_preds, target[:, None].astype(jnp.int32),
                               axis=-1)[:, 0]
    loss2 = (1.0 - eps) * nll.mean()
    return loss1 + loss2


if __name__ == "__main__":
    key = jax.random.PRNGKey(0)
    ks = jax.random.split(key, 8)

    # Case 1: small f32 logits, single tile / single partition.
    n1, c1 = 8, 32
    logits1 = jax.random.normal(ks[0], (n1, c1), dtype=jnp.float32)
    target1 = jax.random.randint(ks[1], (n1,), 0, c1, dtype=jnp.int32)
    got1 = jax.block_until_ready(label_smoothing_crossentropy(logits1, target1, eps=0.1))
    ref1 = _reference(logits1, target1, eps=0.1)
    assert jnp.allclose(got1, ref1, atol=1e-5, rtol=1e-5), (got1, ref1)

    # Case 2: N not a multiple of the forced row tile -> 2-partition grid with a
    # ragged (masked) final block.
    n2, c2 = 13, 40
    logits2 = jax.random.normal(ks[2], (n2, c2), dtype=jnp.float32) * 3.0
    target2 = jax.random.randint(ks[3], (n2,), 0, c2, dtype=jnp.int32)
    got2 = jax.block_until_ready(
        label_smoothing_crossentropy(logits2, target2, eps=0.1, max_tile_rows=8))
    ref2 = _reference(logits2, target2, eps=0.1)
    assert jnp.allclose(got2, ref2, atol=1e-5, rtol=1e-5), (got2, ref2)

    # Case 3: odd number of row blocks -> clamped duplicate block on partition 1
    # (contributes zero via the row mask).
    n3, c3 = 24, 16
    logits3 = jax.random.normal(ks[4], (n3, c3), dtype=jnp.float32)
    target3 = jax.random.randint(ks[5], (n3,), 0, c3, dtype=jnp.int32)
    got3 = jax.block_until_ready(
        label_smoothing_crossentropy(logits3, target3, eps=0.1, max_tile_rows=8))
    ref3 = _reference(logits3, target3, eps=0.1)
    assert jnp.allclose(got3, ref3, atol=1e-5, rtol=1e-5), (got3, ref3)

    # Case 4: bf16 logits kept native in HBM/VMEM, upcast only inside the kernel.
    n4, c4 = 16, 128
    logits4 = jax.random.normal(ks[6], (n4, c4), dtype=jnp.bfloat16)
    target4 = jax.random.randint(ks[7], (n4,), 0, c4, dtype=jnp.int32)
    got4 = jax.block_until_ready(label_smoothing_crossentropy(logits4, target4, eps=0.1))
    ref4 = _reference(logits4, target4, eps=0.1)
    assert jnp.allclose(got4, ref4, atol=1e-4, rtol=1e-4), (got4, ref4)

    print("KERNEL_OK")
</pallas_src>

<mosaic_0001>
module attributes {stable_mosaic.version = 11 : i64} {
  func.func @_ls_ce_kernel(%arg0: i32, %arg1: i32, %arg2: memref<8x32xf32, #tpu.memory_space<vmem>>, %arg3: memref<1x1x8xi32, #tpu.memory_space<vmem>>, %arg4: memref<1x1x1xf32, #tpu.memory_space<vmem>>, %arg5: memref<1x1xf32, #tpu.memory_space<vmem>>) attributes {dimension_semantics = [#tpu.dimension_semantics<parallel>, #tpu.dimension_semantics<arbitrary>], iteration_bounds = array<i64: 1, 1>, scalar_prefetch = 0 : i64, scratch_operands = 1 : i64, tpu.core_type = #tpu.core_type<tc>, window_params = [{transform_indices = @transform_0, window_bounds = array<i64: 8, 32>}, {transform_indices = @transform_1, window_bounds = array<i64: 1, 1, 8>}, {transform_indices = @transform_2, window_bounds = array<i64: 1, 1, 1>}]} {
    %c0_i32 = arith.constant 0 : i32
    %0 = arith.cmpi eq, %arg1, %c0_i32 : i32
    %1 = arith.extui %0 : i1 to i32
    %c0_i32_0 = arith.constant 0 : i32
    %2 = arith.cmpi ne, %1, %c0_i32_0 : i32
    scf.if %2 {
      %cst_18 = arith.constant 0.000000e+00 : f32
      %42 = vector.broadcast %cst_18 : f32 to vector<1x1xf32>
      %c0_19 = arith.constant 0 : index
      %c0_20 = arith.constant 0 : index
      %43 = vector.load %arg5[%c0_19, %c0_20] : memref<1x1xf32, #tpu.memory_space<vmem>>, vector<1x1xf32>
      tpu.vector_store %arg5[%c0_19, %c0_20], %42 {strides = array<i32>} : memref<1x1xf32, #tpu.memory_space<vmem>>, vector<1x1xf32>,
    } else {
    }
    %c0 = arith.constant 0 : index
    %c0_1 = arith.constant 0 : index
    %3 = vector.load %arg2[%c0, %c0_1] : memref<8x32xf32, #tpu.memory_space<vmem>>, vector<8x32xf32>
    %c0_2 = arith.constant 0 : index
    %c0_3 = arith.constant 0 : index
    %c0_4 = arith.constant 0 : index
    %4 = vector.load %arg3[%c0_2, %c0_3, %c0_4] : memref<1x1x8xi32, #tpu.memory_space<vmem>>, vector<1x1x8xi32>
    %5 = vector.shape_cast %4 : vector<1x1x8xi32> to vector<1x8xi32>
    %6 = tpu.transpose %5, [1, 0] : vector<1x8xi32> -> vector<8x1xi32>
    %7 = tpu.iota {dimensions = array<i32: 1>} : vector<8x32xi32>
    %c0_5 = arith.constant 0 : index
    %c0_6 = arith.constant 0 : index
    %8 = vector.load %arg5[%c0_5, %c0_6] : memref<1x1xf32, #tpu.memory_space<vmem>>, vector<1x1xf32>
    %9 = vector.broadcast %6 : vector<8x1xi32> to vector<8x32xi32>
    %10 = arith.cmpi eq, %7, %9 : vector<8x32xi32>
    %cst = arith.constant 0.000000e+00 : f32
    %11 = vector.broadcast %cst : f32 to vector<8x32xf32>
    %12 = arith.select %10, %3, %11 : vector<8x32xi1>, vector<8x32xf32>
    %cst_7 = arith.constant dense<0.000000e+00> : vector<8xf32>
    %13 = vector.multi_reduction <add>, %12, %cst_7 [1] : vector<8x32xf32> to vector<8xf32>
    %14 = vector.shape_cast %13 : vector<8xf32> to vector<8x1xf32>
    %cst_8 = arith.constant dense<0xFF800000> : vector<8xf32>
    %15 = vector.multi_reduction <maximumf>, %3, %cst_8 [1] : vector<8x32xf32> to vector<8xf32>
    %16 = vector.shape_cast %15 : vector<8xf32> to vector<8x1xf32>
    %17 = vector.broadcast %16 : vector<8x1xf32> to vector<8x32xf32>
    %18 = arith.subf %3, %17 : vector<8x32xf32>
    %19 = math.exp %18 : vector<8x32xf32>
    %cst_9 = arith.constant dense<0.000000e+00> : vector<8xf32>
    %20 = vector.multi_reduction <add>, %19, %cst_9 [1] : vector<8x32xf32> to vector<8xf32>
    %21 = vector.shape_cast %20 : vector<8xf32> to vector<8x1xf32>
    %22 = math.log %21 : vector<8x1xf32>
    %23 = arith.addf %16, %22 : vector<8x1xf32>
    %cst_10 = arith.constant dense<0.000000e+00> : vector<8xf32>
    %24 = vector.multi_reduction <add>, %3, %cst_10 [1] : vector<8x32xf32> to vector<8xf32>
    %25 = vector.shape_cast %24 : vector<8xf32> to vector<8x1xf32>
    %cst_11 = arith.constant 3.125000e-03 : f32
    %26 = vector.broadcast %cst_11 : f32 to vector<8x1xf32>
    %27 = arith.mulf %26, %25 : vector<8x1xf32>
    %28 = arith.subf %23, %27 : vector<8x1xf32>
    %cst_12 = arith.constant 0.899999976 : f32
    %29 = vector.broadcast %cst_12 : f32 to vector<8x1xf32>
    %30 = arith.mulf %29, %14 : vector<8x1xf32>
    %31 = arith.subf %28, %30 : vector<8x1xf32>
    %32 = vector.shape_cast %31 : vector<8x1xf32> to vector<1x8x1xf32>
    %cst_13 = arith.constant dense<0.000000e+00> : vector<1xf32>
    %33 = vector.multi_reduction <add>, %32, %cst_13 [1, 2] : vector<1x8x1xf32> to vector<1xf32>
    %34 = vector.shape_cast %33 : vector<1xf32> to vector<1x1x1xf32>
    %35 = vector.extract %34[0, 0, 0] : f32 from vector<1x1x1xf32>
    %36 = vector.broadcast %35 : f32 to vector<1x1xf32>
    %37 = arith.addf %8, %36 : vector<1x1xf32>
    %c0_14 = arith.constant 0 : index
    %c0_15 = arith.constant 0 : index
    %38 = vector.load %arg5[%c0_14, %c0_15] : memref<1x1xf32, #tpu.memory_space<vmem>>, vector<1x1xf32>
    tpu.vector_store %arg5[%c0_14, %c0_15], %37 {strides = array<i32>} : memref<1x1xf32, #tpu.memory_space<vmem>>, vector<1x1xf32>,
    %c0_i32_16 = arith.constant 0 : i32
    %39 = arith.cmpi eq, %arg1, %c0_i32_16 : i32
    %40 = arith.extui %39 : i1 to i32
    %c0_i32_17 = arith.constant 0 : i32
    %41 = arith.cmpi ne, %40, %c0_i32_17 : i32
    scf.if %41 {
      %c0_18 = arith.constant 0 : index
      %c0_19 = arith.constant 0 : index
      %42 = vector.load %arg5[%c0_18, %c0_19] : memref<1x1xf32, #tpu.memory_space<vmem>>, vector<1x1xf32>
      %cst_20 = arith.constant 1.250000e-01 : f32
      %43 = vector.broadcast %cst_20 : f32 to vector<1x1xf32>
      %44 = arith.mulf %42, %43 : vector<1x1xf32>
      %c0_21 = arith.constant 0 : index
      %c0_22 = arith.constant 0 : index
      %c0_23 = arith.constant 0 : index
      %45 = vector.load %arg4[%c0_21, %c0_22, %c0_23] : memref<1x1x1xf32, #tpu.memory_space<vmem>>, vector<1x1x1xf32>
      %46 = vector.shape_cast %45 : vector<1x1x1xf32> to vector<1x1xf32>
      %47 = vector.shape_cast %44 : vector<1x1xf32> to vector<1x1x1xf32>
      tpu.vector_store %arg4[%c0_21, %c0_22, %c0_23], %47 {strides = array<i32>} : memref<1x1x1xf32, #tpu.memory_space<vmem>>, vector<1x1x1xf32>,
    } else {
    }
    return
  }
  func.func @transform_0(%arg0: i32, %arg1: i32) -> (i32, i32) {
    %c1_i32 = arith.constant 1 : i32
    %0 = arith.muli %arg0, %c1_i32 : i32
    %1 = arith.addi %0, %arg1 : i32
    %c0_i32 = arith.constant 0 : i32
    %c0_i32_0 = arith.constant 0 : i32
    return %1, %c0_i32 : i32, i32
  }
  func.func @transform_1(%arg0: i32, %arg1: i32) -> (i32, i32, i32) {
    %c1_i32 = arith.constant 1 : i32
    %0 = arith.muli %arg0, %c1_i32 : i32
    %1 = arith.addi %0, %arg1 : i32
    %c0_i32 = arith.constant 0 : i32
    %c0_i32_0 = arith.constant 0 : i32
    %c0_i32_1 = arith.constant 0 : i32
    return %1, %c0_i32, %c0_i32_0 : i32, i32, i32
  }
  func.func @transform_2(%arg0: i32, %arg1: i32) -> (i32, i32, i32) {
    %c0_i32 = arith.constant 0 : i32
    %c0_i32_0 = arith.constant 0 : i32
    %c0_i32_1 = arith.constant 0 : i32
    return %arg0, %c0_i32, %c0_i32_0 : i32, i32, i32
  }
}

</mosaic_0001>

<bundles_post_ra>
// kernel: tpu_custom_call.1
= control target key start
LH: loop header
LB: loop body
LE: loop exit
PB: predicated region body
PF: predicated region fallthrough
CT: control target
= control target key end

     0   :  { %7 = vsyncpa [#allocation4], 0  ;;  %s284_s0 = inlined_call_operand.hbm [shape: f32[8,32], index: 0, kind: input, shape index: {}]   ;;  %s285_s1 = inlined_call_operand.hbm [shape: s32[1,1,8], index: 1, kind: input, shape index: {}]   ;;  %s286_s2 = inlined_call_operand.hbm [shape: f32[1,1,1], index: 2, kind: output, shape index: {}]  }
   0x1   :  { %8 = vsyncpa [#allocation7], 0 }
   0x2   :  { %9 = vsyncpa [#allocation5], 0  ;;  %s18_s11 = sshll.u32 %s284_s0, 4  ;;  %s248_s12 = smov [#allocation3]   ;;  %s19_s11 = int_to_ptr.hbm [resolvable:$true] %s18_s11 }
   0x3   :  { %s20_s13 = sshll.u32 %s248_s12, 4  ;;  %s31_s16 = sshll.u32 %s285_s1, 4  ;;  %s21_s13 = int_to_ptr.vmem [resolvable:$true] %s20_s13  ;;  %s32_s16 = int_to_ptr.hbm [resolvable:$true] %s31_s16 }
   0x4   :  { %23 = dma.hbm_to_vmem [thread:$0]  %s19_s11, 128, %s21_s13, [#allocation4]  }
   0x5   :  { %s249_s17 = smov [#allocation6]  }
   0x6   :  { %s33_s18 = sshll.u32 %s249_s17, 4  ;;  %s34_s18 = int_to_ptr.vmem [resolvable:$true] %s33_s18 }
   0x7   :  { %36 = dma.hbm_to_vmem [thread:$0]  %s32_s16, 16, %s34_s18, [#allocation7]  }
   0x8   :  { %242 = dma.done.wait [#allocation4], 128  }
   0x9   :  { %243 = vsyncadd [#allocation4], 4294967168 }
   0xa   :  { %244 = dma.done.wait [#allocation7], 16  }
   0xb   :  { %245 = vsyncadd [#allocation7], 4294967280  ;;  %vm95_vm0 = vcmask 261120   ;;  %v53_v0 = vld [vmem:[#allocation3] sm:$0xff]  ;;  %v54_v2 = vld [vmem:[#allocation6] sm:$0x1]  ;;  %v87_v11 = vlaneseq }
   0xc   :  { %v99_v1 = vsel %vm95_vm0, %v53_v0, -inf  ;;  %v250_v3 = vmov 0   ;;  %v111_v6 = vsel %vm95_vm0, %v53_v0, 0.0  ;;  %vm118_vm2 = vcmask 7168   ;;  %s252_s1 = smov [#allocation8]   ;;  %s146_s22 = sshll.u32 %s286_s2, 4  ;;  %s147_s22 = int_to_ptr.hbm [resolvable:$true] %s146_s22 }
   0xd   :  { %100 = vmax.xlane.f32.xlu0 %v99_v1  ;;  %164 = vset.pattern.permute.xlu1 %v250_v3  ;;  %v88_v12 = vand.u32 127, %v87_v11  ;;  %vm51_vm3 = vcmask 0   ;;  %v251_v27 = vmov 0.0   ;;  %s144_s19 = sshll.u32 %s252_s1, 4  ;;  %s145_s19 = int_to_ptr.vmem [resolvable:$true] %s144_s19 }
   0xe   :  { %112 = vadd.xlane.f32.xlu2 %v111_v6  ;;  %52 = vst.msk [vmem:[#allocation2] sm:$0x1] %vm51_vm3, %v251_v27 }
  0x15   :  { %v89_v35 = vld [vmem:[#allocation2] sm:$0x1] }
  0x36   :  { %55 = vxpose.xlu0.b32.start.end [1/1] (short) (narrow) %v54_v2, 8 }
  0x80   :  { %v101_v4 = vpop.xlane.xlu0 %100 }
  0x81   :  { %v102_v7 = vsub.f32 %v53_v0, %v101_v4  ;;  %v113_v18 = vpop.xlane.xlu2 %112 }
  0x82   :  { %v114_v21 = vmul.f32 0.003125, %v113_v18 }
  0x83   :  { %v103_v8 = vmul.f32 1.442695, %v102_v7 }
  0x85   :  { %166 = vpow2.f32 %v103_v8 }
  0x8b   :  { %v167_v9 = vpop.eup %166 }
  0x8c   :  { %v105_v10 = vsel %vm95_vm0, %v167_v9, 0.0 }
  0x9d   :  { %165 = vset.pattern.permute.xlu0 %v250_v3 }
  0xda   :  { %v71_v5 = vpop.trf.xlu0 }
  0xdb   :  { %91 = vperm.xlu1 %164, %v71_v5  }
 0x105   :  { %106 = vadd.xlane.f32.xlu1 %v105_v10 }
 0x14d   :  { %v92_v13 = vpop.permute.xlu1 %91 }
 0x14e   :  { %vm93_vm1 = vcmp.eq.s32.totalorder %v88_v12, %v92_v13 }
 0x14f   :  { %v94_v14 = vsel %vm93_vm1, %v53_v0, 0.0 }
 0x150   :  { %v96_v15 = vsel %vm95_vm0, %v94_v14, 0.0 }
 0x151   :  { %97 = vadd.xlane.f32.xlu2 %v96_v15 }
 0x178   :  { %v107_v16 = vpop.xlane.xlu1 %106 }
 0x179   :  { %168 = vlog2.f32 %v107_v16 }
 0x17f   :  { %v169_v17 = vpop.eup %168 }
 0x180   :  { %v109_v19 = vmul.f32 0.6931472, %v169_v17 }
 0x182   :  { %v110_v20 = vadd.f32 %v109_v19, %v101_v4 }
 0x184   :  { %v115_v23 = vsub.f32 %v110_v20, %v114_v21 }
 0x1c4   :  { %v98_v22 = vpop.xlane.xlu2 %97 }
 0x1c5   :  { %v116_v24 = vmul.f32 0.9, %v98_v22 }
 0x1c7   :  { %v117_v25 = vsub.f32 %v115_v23, %v116_v24 }
 0x1c9   :  { %v119_v26 = vsel %vm118_vm2, %v117_v25, 0.0 }
 0x1ca   :  { %120 = vadd.xlane.f32.xlu2 %v119_v26 }
 0x23d   :  { %v121_v28 = vpop.xlane.xlu2 %120 }
 0x23e   :  { %v122_v29 = vrot.slane %v121_v28, 4 }
 0x240   :  { %v123_v30 = vadd.f32 %v122_v29, %v121_v28 }
 0x242   :  { %v124_v31 = vrot.slane %v123_v30, 2 }
 0x244   :  { %v125_v32 = vadd.f32 %v124_v31, %v123_v30 }
 0x246   :  { %v126_v33 = vrot.slane %v125_v32, 1 }
 0x248   :  { %v127_v34 = vadd.f32 %v126_v33, %v125_v32 }
 0x24a   :  { %157 = vpush %v127_v34 }
 0x27b   :  { %s158_s0 = spop %157 }
 0x27c   :  { %v129_v36 = vstv %s158_s0 }
 0x27d   :  { %v130_v37 = vadd.f32 %v129_v36, %v89_v35 }
 0x27f   :  { %132 = vst.msk [vmem:[#allocation2] sm:$0x1] %vm51_vm3, %v130_v37 }
 0x286   :  { %v136_v38 = vld [vmem:[#allocation2] sm:$0x1] }
 0x287   :  { %v137_v39 = vmul.f32 0.125, %v136_v38 }
 0x289   :  { %138 = vst.msk [vmem:[#allocation8] sm:$0x1] %vm51_vm3, %v137_v39 }
 0x28a   :  { %149 = dma.vmem_to_hbm [thread:$0]  %s145_s19, 16, %s147_s22, [#allocation5]  }
 0x28b   :  { %246 = dma.done.wait [#allocation5], 16  }
 0x28c   :  { %247 = vsyncadd [#allocation5], 4294967280 }
 0x28d   :  { %154 = vsyncpa [#allocation4], 1 }
 0x28e   :  { %155 = vsyncpa [#allocation7], 1 }
 0x28f   :  { %156 = vsyncpa [#allocation5], 1 }

</bundles_post_ra>
